<compile_context>
chip_gen: v5e
topology: v5e:2x2
jax: 0.10.0
libtpu: 0.0.40
codegen_flags: <defaults>
</compile_context>

<pallas_src>
import jax
import jax.numpy as jnp
from jax.experimental import pallas as pl
from jax.experimental.pallas import tpu as pltpu

# ---- model hyperparameters (scaled-down but structurally identical to the PyTorch module) ----
EMPIRICAL_COVERAGE_MEAN = 6.2
RESOLUTION = 10
INITIAL_BIAS = EMPIRICAL_COVERAGE_MEAN * RESOLUTION   # 62.0, fills the dense bias

N_FEATURES = 4        # conv in_channels
N_FILTERS = 32        # conv out_channels
KERNEL_SIZE = 15
CONV_STRIDE = 2
POOL_H, POOL_W = 4, 2  # MaxPool2d kernel/stride (4, 2)
OUTPUT_LEN = 24        # small stand-in for 3000 // resolution = 300
SEQ_LEN = 128          # small stand-in for ~5000bp input
BATCH = 2
LANE = 128


def _round_up(n, m):
    return ((n + m - 1) // m) * m


def dna_convnet_kernel(x4_ref, wcat_ref, bconv_ref, wdense_ref, bdense_ref, out_ref, pooled_ref):
    """Grid = (batch b, channel-group g).  Per (b, g):

    x4_ref     : (1, 4C, T4_pad)      phase-4 split input for batch b (lane t = input pos 4t+r)
    wcat_ref   : (2F, Q*4C)           conv taps; rows [pF + j*gp + g'] hold filter 4g'+j, parity p
    bconv_ref  : (F, 1)               conv bias in the same permuted filter order
    wdense_ref : (Wp_pad, OUT_PAD)    dense-K tile for channel group g (streamed, double-buffered)
    bdense_ref : (1, OUT_PAD)
    out_ref    : (1, 1, OUT_PAD)      resident accumulator for batch b (written back once per b)
    pooled_ref : (gp, Wp_pad)         VMEM scratch: pooled activations for batch b
    """
    g = pl.program_id(1)
    F = wcat_ref.shape[0] // 2
    gp, wp_pad = pooled_ref.shape
    pool_h = F // gp
    c4 = x4_ref.shape[1]
    Q = wcat_ref.shape[1] // c4

    @pl.when(g == 0)
    def _conv_and_pool():
        x4 = x4_ref[0]                                                        # (4C, T4_pad)
        # In-kernel im2col: Q lane-shifted contiguous slices stacked on sublanes -> (Q*4C, Wp_pad).
        rhs = jnp.concatenate([x4[:, q:q + wp_pad] for q in range(Q)], axis=0)
        # One MXU matmul covers both conv-output-time parities (stacked on the filter axis).
        conv = jnp.dot(wcat_ref[...], rhs, preferred_element_type=jnp.float32)  # (2F, Wp_pad)
        # Width-2 time pool == max of the two parity slabs; per-filter bias added once after.
        tmax = jnp.maximum(conv[:F, :], conv[F:, :]) + bconv_ref[...]           # (F, Wp_pad)
        # Height-4 channel pool == max of pool_h aligned 8-row slabs (filters pre-permuted).
        pooled = tmax[0:gp, :]
        for j in range(1, pool_h):
            pooled = jnp.maximum(pooled, tmax[j * gp:(j + 1) * gp, :])
        pooled_ref[...] = pooled
        out_ref[...] = bdense_ref[...][None]          # init dense accumulator with the bias

    # Dense contraction K-tile for channel group g: (1, Wp_pad) @ (Wp_pad, OUT_PAD).
    lhs = pooled_ref[pl.ds(g, 1), :]
    out_ref[...] += jnp.dot(lhs, wdense_ref[...], preferred_element_type=jnp.float32)[None]

    @pl.when(g == pl.num_programs(1) - 1)
    def _softplus():
        y = out_ref[...]
        # Softplus(beta=1, threshold=20): x if x > 20 else log1p(exp(x)).
        out_ref[...] = jnp.where(y > 20.0, y, jnp.log1p(jnp.exp(jnp.minimum(y, 20.0))))


def dna_convnet_forward(x, params):
    """x: (B, L, C_in) float32 -> (B, OUTPUT_LEN) float32 (same semantics as the torch module)."""
    B, L, C = x.shape
    wconv, bconv = params["wconv"], params["bconv"]           # (F, C, K), (F,)
    wdense, bdense = params["wdense"], params["bdense"]       # (OUT, gp*Wp), (OUT,)
    F, _, K = wconv.shape
    OUT = wdense.shape[0]

    # Parity folding of the width-2 pool relies on conv stride == pool width == 2.
    assert CONV_STRIDE == 2 and POOL_W == 2, "kernel assumes conv stride 2 and time-pool width 2"
    l_conv = (L - K) // CONV_STRIDE + 1
    assert l_conv >= POOL_W
    wp = l_conv // POOL_W                      # pooled time width (floor, matches torch)
    gp = F // POOL_H                           # pooled channel groups
    assert wdense.shape[1] == gp * wp, "dense in_features must equal flattened pooled size"

    wp_pad = _round_up(wp, LANE)               # 128-aligned lane slab per (batch, group)
    out_pad = _round_up(OUT, LANE)
    Q = (K + 1) // 4 + 1                       # number of phase-4 lane shifts (m = 2p + k <= K+1)

    # ---- input: phase-4 split (B, C, L) -> (B, 4C, L/4); pure reshape/transpose, 1x traffic ----
    x_ncw = jnp.transpose(x, (0, 2, 1))                                    # (B, C, L)  NCW
    lp = _round_up(L, 4)
    x_ncw = jnp.pad(x_ncw, ((0, 0), (0, 0), (0, lp - L)))
    t4 = lp // 4
    x4 = jnp.transpose(x_ncw.reshape(B, C, t4, 4), (0, 1, 3, 2)).reshape(B, C * 4, t4)
    t4_pad = _round_up(max(t4, wp_pad + Q), LANE)
    x4 = jnp.pad(x4, ((0, 0), (0, 0), (0, t4_pad - t4)))                   # (B, 4C, T4_pad)

    # ---- conv taps: permute filters (row j*gp+g holds filter 4g+j) and split into the two
    #      conv-output-time parities; column = q*4C + c*4 + r holds W[f, c, 4q + r - 2p]. ----
    perm = jnp.array([POOL_H * (r % gp) + (r // gp) for r in range(F)], dtype=jnp.int32)

    def taps(p):
        w = jnp.pad(wconv, ((0, 0), (0, 0), (2 * p, 4 * Q - K - 2 * p)))   # (F, C, 4Q)
        w = w[perm].reshape(F, C, Q, 4)
        return jnp.transpose(w, (0, 2, 1, 3)).reshape(F, Q * C * 4)

    wcat = jnp.concatenate([taps(0), taps(1)], axis=0)                     # (2F, Q*4C)
    bconv_perm = bconv[perm].reshape(F, 1)

    # ---- dense weight arranged as (gp*Wp_pad, OUT_PAD): row g*Wp_pad + w <- Wd[:, g*Wp + w];
    #      zero rows for the padded w lanes make the Wp_pad padding inert. ----
    wdense_stk = jnp.pad(wdense.T.reshape(gp, wp, OUT),
                         ((0, 0), (0, wp_pad - wp), (0, out_pad - OUT))
                         ).reshape(gp * wp_pad, out_pad)
    bdense_pad = jnp.pad(bdense.reshape(1, OUT), ((0, 0), (0, out_pad - OUT)))

    out = pl.pallas_call(
        dna_convnet_kernel,
        out_shape=jax.ShapeDtypeStruct((B, 1, out_pad), jnp.float32),
        grid_spec=pltpu.PrefetchScalarGridSpec(
            num_scalar_prefetch=0,
            grid=(B, gp),
            in_specs=[
                pl.BlockSpec((1, C * 4, t4_pad), lambda b, g: (b, 0, 0)),   # input (per batch)
                pl.BlockSpec((2 * F, Q * C * 4), lambda b, g: (0, 0)),      # conv taps
                pl.BlockSpec((F, 1), lambda b, g: (0, 0)),                  # conv bias
                pl.BlockSpec((wp_pad, out_pad), lambda b, g: (g, 0)),       # dense K-tile (streamed)
                pl.BlockSpec((1, out_pad), lambda b, g: (0, 0)),            # dense bias
            ],
            out_specs=pl.BlockSpec((1, 1, out_pad), lambda b, g: (b, 0, 0)),
            scratch_shapes=[pltpu.VMEM((gp, wp_pad), jnp.float32)],
        ),
        compiler_params=pltpu.CompilerParams(
            dimension_semantics=("parallel", "arbitrary")),
    )(x4, wcat, bconv_perm, wdense_stk, bdense_pad)
    return out[:, 0, :OUT]


def reference_forward(x, params):
    """Pure-JAX reference mirroring the PyTorch forward exactly."""
    x_ncw = jnp.transpose(x, (0, 2, 1))
    conv = jax.lax.conv_general_dilated(
        x_ncw, params["wconv"], window_strides=(CONV_STRIDE,), padding="VALID",
        dimension_numbers=("NCH", "OIH", "NCH"))
    conv = conv + params["bconv"][None, :, None]                          # (B, F, l_conv)
    pooled = jax.lax.reduce_window(
        conv, -jnp.inf, jax.lax.max,
        window_dimensions=(1, POOL_H, POOL_W),
        window_strides=(1, POOL_H, POOL_W), padding="VALID")              # (B, F//4, Wp)
    flat = pooled.reshape(x.shape[0], -1)
    y = flat @ params["wdense"].T + params["bdense"]
    return jnp.where(y > 20.0, y, jnp.log1p(jnp.exp(jnp.minimum(y, 20.0))))


def init_params(key):
    l_conv = (SEQ_LEN - KERNEL_SIZE) // CONV_STRIDE + 1
    dense_in = (N_FILTERS // POOL_H) * (l_conv // POOL_W)
    k1, k2, k3 = jax.random.split(key, 3)
    return {
        "wconv": 0.1 * jax.random.normal(k1, (N_FILTERS, N_FEATURES, KERNEL_SIZE), jnp.float32),
        "bconv": 0.1 * jax.random.normal(k2, (N_FILTERS,), jnp.float32),
        "wdense": 0.05 * jax.random.normal(k3, (OUTPUT_LEN, dense_in), jnp.float32),
        "bdense": jnp.full((OUTPUT_LEN,), INITIAL_BIAS, jnp.float32),  # .fill_(62.0)
    }


if __name__ == "__main__":
    key = jax.random.PRNGKey(0)
    kx, kp = jax.random.split(key)
    x = jax.random.normal(kx, (BATCH, SEQ_LEN, N_FEATURES), jnp.float32)
    params = init_params(kp)

    out = jax.block_until_ready(jax.jit(dna_convnet_forward)(x, params))
    ref = jax.block_until_ready(reference_forward(x, params))

    assert out.shape == (BATCH, OUTPUT_LEN), out.shape
    max_err = float(jnp.max(jnp.abs(out - ref)))
    assert jnp.allclose(out, ref, rtol=1e-3, atol=1e-2), max_err
    print("KERNEL_OK")
</pallas_src>

<mosaic_0001>
module attributes {stable_mosaic.version = 11 : i64} {
  func.func @dna_convnet_kernel(%arg0: i32, %arg1: i32, %arg2: memref<1x16x256xf32, #tpu.memory_space<vmem>>, %arg3: memref<64x80xf32, #tpu.memory_space<vmem>>, %arg4: memref<32x1xf32, #tpu.memory_space<vmem>>, %arg5: memref<128x128xf32, #tpu.memory_space<vmem>>, %arg6: memref<1x128xf32, #tpu.memory_space<vmem>>, %arg7: memref<1x1x128xf32, #tpu.memory_space<vmem>>, %arg8: memref<8x128xf32, #tpu.memory_space<vmem>>) attributes {dimension_semantics = [#tpu.dimension_semantics<parallel>, #tpu.dimension_semantics<arbitrary>], iteration_bounds = array<i64: 2, 8>, scalar_prefetch = 0 : i64, scratch_operands = 1 : i64, tpu.core_type = #tpu.core_type<tc>, window_params = [{transform_indices = @transform_0, window_bounds = array<i64: 1, 16, 256>}, {pipeline_mode = #tpu.pipeline_mode<synchronous>, transform_indices = @transform_1, window_bounds = array<i64: 64, 80>}, {pipeline_mode = #tpu.pipeline_mode<synchronous>, transform_indices = @transform_2, window_bounds = array<i64: 32, 1>}, {transform_indices = @transform_3, window_bounds = array<i64: 128, 128>}, {pipeline_mode = #tpu.pipeline_mode<synchronous>, transform_indices = @transform_4, window_bounds = array<i64: 1, 128>}, {transform_indices = @transform_5, window_bounds = array<i64: 1, 1, 128>}]} {
    %c0_i32 = arith.constant 0 : i32
    %0 = arith.cmpi eq, %arg1, %c0_i32 : i32
    %1 = arith.extui %0 : i1 to i32
    %c0_i32_0 = arith.constant 0 : i32
    %2 = arith.cmpi ne, %1, %c0_i32_0 : i32
    scf.if %2 {
      %c0_10 = arith.constant 0 : index
      %c0_11 = arith.constant 0 : index
      %c0_12 = arith.constant 0 : index
      %14 = vector.load %arg2[%c0_10, %c0_11, %c0_12] : memref<1x16x256xf32, #tpu.memory_space<vmem>>, vector<1x16x256xf32>
      %15 = vector.shape_cast %14 : vector<1x16x256xf32> to vector<16x256xf32>
      %16 = vector.extract_strided_slice %15 {offsets = [0, 0], sizes = [16, 128], strides = [1, 1]} : vector<16x256xf32> to vector<16x128xf32>
      %17 = vector.extract_strided_slice %15 {offsets = [0, 1], sizes = [16, 128], strides = [1, 1]} : vector<16x256xf32> to vector<16x128xf32>
      %18 = vector.extract_strided_slice %15 {offsets = [0, 2], sizes = [16, 128], strides = [1, 1]} : vector<16x256xf32> to vector<16x128xf32>
      %19 = vector.extract_strided_slice %15 {offsets = [0, 3], sizes = [16, 128], strides = [1, 1]} : vector<16x256xf32> to vector<16x128xf32>
      %20 = vector.extract_strided_slice %15 {offsets = [0, 4], sizes = [16, 128], strides = [1, 1]} : vector<16x256xf32> to vector<16x128xf32>
      %21 = tpu.concatenate %16, %17, %18, %19, %20 in 0 : vector<16x128xf32>, vector<16x128xf32>, vector<16x128xf32>, vector<16x128xf32>, vector<16x128xf32> -> vector<80x128xf32>
      %c0_13 = arith.constant 0 : index
      %c0_14 = arith.constant 0 : index
      %22 = vector.load %arg3[%c0_13, %c0_14] : memref<64x80xf32, #tpu.memory_space<vmem>>, vector<64x80xf32>
      %cst_15 = arith.constant dense<0.000000e+00> : vector<64x128xf32>
      %23 = tpu.matmul %22, %21, %cst_15 {dimension_numbers = #tpu.dot_dimension_numbers<[1], [0], [0], [1], [0, 0, 1, 1], [], []>} : vector<64x80xf32>, vector<80x128xf32>, vector<64x128xf32> -> vector<64x128xf32>
      %24 = vector.extract_strided_slice %23 {offsets = [0, 0], sizes = [32, 128], strides = [1, 1]} : vector<64x128xf32> to vector<32x128xf32>
      %25 = vector.extract_strided_slice %23 {offsets = [32, 0], sizes = [32, 128], strides = [1, 1]} : vector<64x128xf32> to vector<32x128xf32>
      %26 = arith.maximumf %24, %25 : vector<32x128xf32>
      %c0_16 = arith.constant 0 : index
      %c0_17 = arith.constant 0 : index
      %27 = vector.load %arg4[%c0_16, %c0_17] : memref<32x1xf32, #tpu.memory_space<vmem>>, vector<32x1xf32>
      %28 = vector.broadcast %27 : vector<32x1xf32> to vector<32x128xf32>
      %29 = arith.addf %26, %28 : vector<32x128xf32>
      %30 = vector.extract_strided_slice %29 {offsets = [0, 0], sizes = [8, 128], strides = [1, 1]} : vector<32x128xf32> to vector<8x128xf32>
      %31 = vector.extract_strided_slice %29 {offsets = [8, 0], sizes = [8, 128], strides = [1, 1]} : vector<32x128xf32> to vector<8x128xf32>
      %32 = arith.maximumf %30, %31 : vector<8x128xf32>
      %33 = vector.extract_strided_slice %29 {offsets = [16, 0], sizes = [8, 128], strides = [1, 1]} : vector<32x128xf32> to vector<8x128xf32>
      %34 = arith.maximumf %32, %33 : vector<8x128xf32>
      %35 = vector.extract_strided_slice %29 {offsets = [24, 0], sizes = [8, 128], strides = [1, 1]} : vector<32x128xf32> to vector<8x128xf32>
      %36 = arith.maximumf %34, %35 : vector<8x128xf32>
      %c0_18 = arith.constant 0 : index
      %c0_19 = arith.constant 0 : index
      %37 = vector.load %arg8[%c0_18, %c0_19] : memref<8x128xf32, #tpu.memory_space<vmem>>, vector<8x128xf32>
      tpu.vector_store %arg8[%c0_18, %c0_19], %36 {strides = array<i32>} : memref<8x128xf32, #tpu.memory_space<vmem>>, vector<8x128xf32>,
      %c0_20 = arith.constant 0 : index
      %c0_21 = arith.constant 0 : index
      %38 = vector.load %arg6[%c0_20, %c0_21] : memref<1x128xf32, #tpu.memory_space<vmem>>, vector<1x128xf32>
      %39 = vector.shape_cast %38 : vector<1x128xf32> to vector<1x1x128xf32>
      %c0_22 = arith.constant 0 : index
      %c0_23 = arith.constant 0 : index
      %c0_24 = arith.constant 0 : index
      %40 = vector.load %arg7[%c0_22, %c0_23, %c0_24] : memref<1x1x128xf32, #tpu.memory_space<vmem>>, vector<1x1x128xf32>
      tpu.vector_store %arg7[%c0_22, %c0_23, %c0_24], %39 {strides = array<i32>} : memref<1x1x128xf32, #tpu.memory_space<vmem>>, vector<1x1x128xf32>,
    } else {
    }
    %3 = arith.index_cast %arg1 : i32 to index
    %c0 = arith.constant 0 : index
    %4 = vector.load %arg8[%3, %c0] : memref<8x128xf32, #tpu.memory_space<vmem>>, vector<1x128xf32>
    %c0_1 = arith.constant 0 : index
    %c0_2 = arith.constant 0 : index
    %c0_3 = arith.constant 0 : index
    %5 = vector.load %arg7[%c0_1, %c0_2, %c0_3] : memref<1x1x128xf32, #tpu.memory_space<vmem>>, vector<1x1x128xf32>
    %c0_4 = arith.constant 0 : index
    %c0_5 = arith.constant 0 : index
    %6 = vector.load %arg5[%c0_4, %c0_5] : memref<128x128xf32, #tpu.memory_space<vmem>>, vector<128x128xf32>
    %cst = arith.constant dense<0.000000e+00> : vector<1x128xf32>
    %7 = tpu.matmul %4, %6, %cst {dimension_numbers = #tpu.dot_dimension_numbers<[1], [0], [0], [1], [0, 0, 1, 1], [], []>} : vector<1x128xf32>, vector<128x128xf32>, vector<1x128xf32> -> vector<1x128xf32>
    %8 = vector.shape_cast %7 : vector<1x128xf32> to vector<1x1x128xf32>
    %9 = arith.addf %5, %8 : vector<1x1x128xf32>
    %c0_6 = arith.constant 0 : index
    %c0_7 = arith.constant 0 : index
    %c0_8 = arith.constant 0 : index
    %10 = vector.load %arg7[%c0_6, %c0_7, %c0_8] : memref<1x1x128xf32, #tpu.memory_space<vmem>>, vector<1x1x128xf32>
    tpu.vector_store %arg7[%c0_6, %c0_7, %c0_8], %9 {strides = array<i32>} : memref<1x1x128xf32, #tpu.memory_space<vmem>>, vector<1x1x128xf32>,
    %c7_i32 = arith.constant 7 : i32
    %11 = arith.cmpi eq, %arg1, %c7_i32 : i32
    %12 = arith.extui %11 : i1 to i32
    %c0_i32_9 = arith.constant 0 : i32
    %13 = arith.cmpi ne, %12, %c0_i32_9 : i32
    scf.if %13 {
      %c0_10 = arith.constant 0 : index
      %c0_11 = arith.constant 0 : index
      %c0_12 = arith.constant 0 : index
      %14 = vector.load %arg7[%c0_10, %c0_11, %c0_12] : memref<1x1x128xf32, #tpu.memory_space<vmem>>, vector<1x1x128xf32>
      %cst_13 = arith.constant 2.000000e+01 : f32
      %15 = vector.broadcast %cst_13 : f32 to vector<1x1x128xf32>
      %16 = arith.cmpf ogt, %14, %15 : vector<1x1x128xf32>
      %cst_14 = arith.constant 2.000000e+01 : f32
      %17 = vector.broadcast %cst_14 : f32 to vector<1x1x128xf32>
      %18 = arith.minimumf %14, %17 : vector<1x1x128xf32>
      %19 = math.exp %18 : vector<1x1x128xf32>
      %20 = math.log1p %19 : vector<1x1x128xf32>
      %21 = arith.select %16, %14, %20 : vector<1x1x128xi1>, vector<1x1x128xf32>
      %c0_15 = arith.constant 0 : index
      %c0_16 = arith.constant 0 : index
      %c0_17 = arith.constant 0 : index
      %22 = vector.load %arg7[%c0_15, %c0_16, %c0_17] : memref<1x1x128xf32, #tpu.memory_space<vmem>>, vector<1x1x128xf32>
      tpu.vector_store %arg7[%c0_15, %c0_16, %c0_17], %21 {strides = array<i32>} : memref<1x1x128xf32, #tpu.memory_space<vmem>>, vector<1x1x128xf32>,
    } else {
    }
    return
  }
  func.func @transform_0(%arg0: i32, %arg1: i32) -> (i32, i32, i32) {
    %c0_i32 = arith.constant 0 : i32
    %c0_i32_0 = arith.constant 0 : i32
    %c0_i32_1 = arith.constant 0 : i32
    return %arg0, %c0_i32, %c0_i32_0 : i32, i32, i32
  }
  func.func @transform_1(%arg0: i32, %arg1: i32) -> (i32, i32) {
    %c0_i32 = arith.constant 0 : i32
    %c0_i32_0 = arith.constant 0 : i32
    %c0_i32_1 = arith.constant 0 : i32
    return %c0_i32, %c0_i32_0 : i32, i32
  }
  func.func @transform_2(%arg0: i32, %arg1: i32) -> (i32, i32) {
    %c0_i32 = arith.constant 0 : i32
    %c0_i32_0 = arith.constant 0 : i32
    %c0_i32_1 = arith.constant 0 : i32
    return %c0_i32, %c0_i32_0 : i32, i32
  }
  func.func @transform_3(%arg0: i32, %arg1: i32) -> (i32, i32) {
    %c0_i32 = arith.constant 0 : i32
    %c0_i32_0 = arith.constant 0 : i32
    return %arg1, %c0_i32 : i32, i32
  }
  func.func @transform_4(%arg0: i32, %arg1: i32) -> (i32, i32) {
    %c0_i32 = arith.constant 0 : i32
    %c0_i32_0 = arith.constant 0 : i32
    %c0_i32_1 = arith.constant 0 : i32
    return %c0_i32, %c0_i32_0 : i32, i32
  }
  func.func @transform_5(%arg0: i32, %arg1: i32) -> (i32, i32, i32) {
    %c0_i32 = arith.constant 0 : i32
    %c0_i32_0 = arith.constant 0 : i32
    %c0_i32_1 = arith.constant 0 : i32
    return %arg0, %c0_i32, %c0_i32_0 : i32, i32, i32
  }
}

</mosaic_0001>

<bundles_post_ra>
// kernel: dna_convnet_forward.1
= control target key start
LH: loop header
LB: loop body
LE: loop exit
PB: predicated region body
PF: predicated region fallthrough
CT: control target
= control target key end

     0   :  { %10 = vsyncpa [#allocation4], 0  ;;  %s1110_s0 = inlined_call_operand.vmem [shape: f32[2,16,256], index: 0, kind: input, shape index: {}]   ;;  %s1111_s1 = inlined_call_operand.vmem [shape: f32[64,80], index: 1, kind: input, shape index: {}]   ;;  %s1112_s2 = inlined_call_operand.vmem [shape: f32[32,1], index: 2, kind: input, shape index: {}]   ;;  %s1113_s3 = inlined_call_operand.vmem [shape: f32[1024,128], index: 3, kind: input, shape index: {}]   ;;  %s1114_s4 = inlined_call_operand.vmem [shape: f32[1,128], index: 4, kind: input, shape index: {}]   ;;  %s1115_s5 = inlined_call_operand.hbm [shape: f32[2,1,128], index: 5, kind: output, shape index: {}]  }
   0x1   :  { %12 = vsyncpa [#allocation4 + $0x1], 0  ;;  %s891_s18 = smov 0   ;;  %s893_s19 = smov 0  }
   0x2   :  { %s895_s20 = smov 0   ;;  %s897_s21 = smov 0  }
   0x3   :  { %s899_s22 = smov 0   ;;  %s901_s23 = smov 0  }
   0x4   :  { %s903_s24 = smov 0   ;;  %s905_s25 = smov 0  }
   0x5 LB: > { %s585_s26 = sadd.s32 4294967295, %s854_s25   ;;  %s586_s27 = sadd.s32 4294967294, %s854_s25   ;;  %s854_s25 = sphi %s905_s25, %s18_s25   ;;  %s850_s24 = sphi %s903_s24, %s1124_s24   ;;  %s846_s23 = sphi %s901_s23, %s1123_s23   ;;  %s842_s22 = sphi %s899_s22, %s1122_s22   ;;  %s838_s21 = sphi %s897_s21, %s1121_s21   ;;  %s834_s20 = sphi %s895_s20, %s1120_s20   ;;  %s830_s19 = sphi %s893_s19, %s1119_s19   ;;  %s826_s18 = sphi %s891_s18, %s1118_s18  }
   0x6   : > { %s27_s28 = sadd.s32 1, %s846_s23  ;;  %s30_s29 = sadd.s32 1, %s850_s24 }
   0x7   : > { %p28_p0 = scmp.ge.s32.totalorder %s27_s28, 8  ;;  %p162_p1 = scmp.ne.s32.totalorder %s834_s20, %s830_s19 }
   0x8   : > { %p163_p2 = scmp.eq.s32.totalorder %s585_s26, 15  ;;  %p168_p4 = scmp.ne.s32.totalorder %s830_s19, %s826_s18 }
   0x9   : > { %s1126_s28 = smov (%p28_p0, %s27_s28), 0  ;;  %s1128_s29 = smov (!%p28_p0, %s30_s29), %s850_s24 }
   0xa   : > { %p940_p3 = por %p163_p2, %p162_p1  ;;  %p32_p5 = scmp.ge.s32.totalorder %s1128_s29, 2 }
   0xb   : > { %p169_p6 = scmp.eq.s32.totalorder %s586_s27, 15  ;;  %p589_p7 = scmp.ge.s32.totalorder %s854_s25, 1 }
   0xc   : > { %p213_p8 = scmp.lt.s32.totalorder %s854_s25, 17  ;;  %s1130_s29 = smov (%p32_p5, %s1128_s29), 0 }
   0xd   : > { %p950_p9 = por %p169_p6, %p168_p4  ;;  %s149_s7 = ssub.s32 %s850_s24, %s1130_s29 }
   0xe   : > { %p214_p10 = pnand %p589_p7, %p213_p8  ;;  %s152_s8 = sadd.s32 1, %s834_s20 }
   0xf   : > { %p150_p11 = scmp.eq.s32.totalorder %s149_s7, 0  ;;  %s243_s10 = sand.u32 (!%p214_p10), 1, %s830_s19  }
  0x10   : > { %217 = sbr.rel (%p214_p10) target bundleno = 532 (0x214), region = 40  ;;  %p245_p12 = scmp.lt.s32.totalorder (!%p214_p10), %s842_s22, 1 }
  0x11   : > { %s958_s9 = scalar_select %p150_p11, %s834_s20, %s152_s8  }
  0x12   : > { %s592_s11 = sshll.u32 (!%p214_p10), %s838_s21, 4  ;;  %s974_s8 = scalar_lea.vmem (!%p214_p10), [#allocation3], %s243_s10 }
  0x13   : > { %p251_p13 = scmp.lt.s32.totalorder (!%p214_p10), %s592_s11, 127  ;;  %p594_p0 = scmp.ne.s32.totalorder (!%p214_p10), %s838_s21, 0 }
  0x15   : > { %s246_s12 = scalar_select %p245_p12, %s842_s22, 1 }
  0x16   : > { %s1132_s11 = smov (!%p251_p13, %s592_s11), 127  ;;  %259 = sbr.rel (%p594_p0) target bundleno = 325 (0x145), region = 44 }
  0x17   : > { %s606_s13 = sshll.u32 %s246_s12, 5  ;;  %s593_s17 = sshll.u32 %s1132_s11, 3 }
  0x18   : > { %s249_s16 = scalar_lea.vmem %s1110_s0, %s606_s13  ;;  %s970_s7 = scalar_lea.vmem %s1113_s3, %s593_s17 }
  0x19   : > { %s856_s12 = smov (!%p594_p0), 124   ;;  %s857_s13 = smov (!%p594_p0), 125  }
  0x1a   : > { %s858_s11 = smov (!%p594_p0), 126   ;;  %s859_s14 = smov (!%p594_p0), 127  }
  0x1b   : > { %v977_v0 = vld [vmem:[%s249_s16 + $0x10] sm:$0xff]  ;;  %v263_v1 = vld [vmem:[%s249_s16 + $0x18] sm:$0xff]  ;;  %v980_v3 = vld [vmem:[%s249_s16] sm:$0xff]  ;;  %vm315_vm0 = vcmask 1014784   ;;  %v860_v18 = vmov 0   ;;  %vm302_vm1 = vcmask 1022976  }
  0x1c   : > { %v713_v2 = vpack.i.bf16 %v263_v1, %v977_v0  ;;  %v261_v4 = vld [vmem:[%s249_s16 + $0x8] sm:$0xff]  ;;  %v400_v12 = vld [vmem:[%s1112_s2 + $0x10] sm:$0xff]  ;;  %755 = vset.pattern.permute.xlu1 %v860_v18  ;;  %754 = vset.pattern.permute.xlu0 %v860_v18  ;;  %v398_v19 = vld [vmem:[%s1112_s2] sm:$0xff]  ;;  %vm289_vm2 = vcmask 1031168   ;;  %vm276_vm3 = vcmask 1039360   ;;  %vm328_vm4 = vcmask 654336  }
  0x1d   : > { %v718_v5 = vpack.i.bf16 %v261_v4, %v980_v3  ;;  %v399_v13 = vld [vmem:[%s1112_s2 + $0x8] sm:$0xff]  ;;  %753 = vset.pattern.permute.xlu2 %v860_v18  ;;  %v324_v42 = vld [vmem:[%s1111_s1 + $0x20] sm:$0xff]  ;;  %v326_v43 = vld [vmem:[%s1111_s1 + $0x30] sm:$0xff] }
  0x1e   : > { %714 = vrot.lane.b32.xlu0 %v713_v2, %s856_s12  ;;  %724 = vrot.lane.b32.xlu1 %v713_v2, %s857_s13  ;;  %v320_v44 = vld [vmem:[%s1111_s1] sm:$0xff]  ;;  %v322_v45 = vld [vmem:[%s1111_s1 + $0x10] sm:$0xff] }
  0x1f   : > { %734 = vrot.lane.b32.xlu2 %v713_v2, %s858_s11  ;;  %v401_v46 = vld [vmem:[%s1112_s2 + $0x18] sm:$0xff]  ;;  %v325_v47 = vld [vmem:[%s1111_s1 + $0x28] sm:$0xff]  ;;  %v430_v51 = vld [vmem:[%s1114_s4] sm:$0x1] }
  0x20   : > { %v327_v48 = vld [vmem:[%s1111_s1 + $0x38] sm:$0xff]  ;;  %v321_v49 = vld [vmem:[%s1111_s1 + $0x8] sm:$0xff]  ;;  %431 = vst [vmem:[%s974_s8] sm:$0x1] %v430_v51 }
  0x21   : > { %v323_v50 = vld [vmem:[%s1111_s1 + $0x18] sm:$0xff] }
  0x26   : > { %719 = vrot.lane.b32.xlu0 %v718_v5, %s856_s12  ;;  %729 = vrot.lane.b32.xlu1 %v718_v5, %s857_s13 }
  0x27   : > { %739 = vrot.lane.b32.xlu2 %v718_v5, %s858_s11 }
  0x2e   : > { %744 = vrot.lane.b32.xlu0 %v713_v2, %s859_s14  ;;  %749 = vrot.lane.b32.xlu1 %v718_v5, %s859_s14 }
  0x2f   : > { %404 = vperm.xlu2 %753, %v398_v19  }
  0x36   : > { %414 = vperm.xlu1 %755, %v400_v12   ;;  %409 = vperm.xlu0 %754, %v399_v13  }
  0x37   : > { %419 = vperm.xlu2 %753, %v401_v46  }
  0x79   : > { %v735_v6 = vpop.permute.xlu2 %734 }
  0x7a   : > { %v737_v26 = vunpack.i.h.bf16 %v735_v6  ;;  %v736_v27 = vunpack.i.l.bf16 %v735_v6 }
  0x7c   : > { %v291_v33 = vsel %vm289_vm2, %v736_v27, %v737_v26 }
  0x81   : > { %v740_v24 = vpop.permute.xlu2 %739 }
  0x82   : > { %v742_v28 = vunpack.i.h.bf16 %v740_v24  ;;  %v741_v29 = vunpack.i.l.bf16 %v740_v24 }
  0x84   : > { %v290_v35 = vsel %vm289_vm2, %v741_v29, %v742_v28 }
  0x89   : > { %v405_v56 = vpop.permute.xlu2 %404 }
  0x90   : > { %v715_v7 = vpop.permute.xlu0 %714  ;;  %v725_v8 = vpop.permute.xlu1 %724 }
  0x91   : > { %v717_v9 = vunpack.i.h.bf16 %v715_v7  ;;  %v716_v10 = vunpack.i.l.bf16 %v715_v7  ;;  %v727_v14 = vunpack.i.h.bf16 %v725_v8  ;;  %v726_v15 = vunpack.i.l.bf16 %v725_v8  ;;  %v420_v7 = vpop.permute.xlu2 %419 }
  0x93   : > { %v317_v11 = vsel %vm315_vm0, %v716_v10, %v717_v9  ;;  %v304_v30 = vsel %vm302_vm1, %v726_v15, %v727_v14 }
  0x94   : > { %359 = vmatpush.msra.mxu0 %v317_v11  ;;  %607 = vmatpush.msra.mxu1 %v317_v11 }
  0x95   : > { %608 = vmatpush.msra.mxu2 %v317_v11  ;;  %609 = vmatpush.msra.mxu3 %v317_v11 }
  0x98   : > { %v720_v16 = vpop.permute.xlu0 %719  ;;  %v730_v17 = vpop.permute.xlu1 %729 }
  0x99   : > { %v722_v20 = vunpack.i.h.bf16 %v720_v16  ;;  %v721_v21 = vunpack.i.l.bf16 %v720_v16  ;;  %v732_v22 = vunpack.i.h.bf16 %v730_v17  ;;  %v731_v23 = vunpack.i.l.bf16 %v730_v17 }
  0x9b   : > { %v316_v25 = vsel %vm315_vm0, %v721_v21, %v722_v20  ;;  %v303_v31 = vsel %vm302_vm1, %v731_v23, %v732_v22 }
  0x9c   : > { %360 = vmatpush.msra.mxu0 %v316_v25  ;;  %610 = vmatpush.msra.mxu1 %v316_v25 }
  0x9d   : > { %611 = vmatpush.msra.mxu2 %v316_v25  ;;  %612 = vmatpush.msra.mxu3 %v316_v25 }
  0x9e   : > { %361 = vmatpush.msra.mxu0 %v304_v30  ;;  %613 = vmatpush.msra.mxu1 %v304_v30 }
  0x9f   : > { %614 = vmatpush.msra.mxu2 %v304_v30  ;;  %615 = vmatpush.msra.mxu3 %v304_v30 }
  0xa0   : > { %362 = vmatpush.msra.mxu0 %v303_v31  ;;  %616 = vmatpush.msra.mxu1 %v303_v31  ;;  %v745_v32 = vpop.permute.xlu0 %744  ;;  %v750_v34 = vpop.permute.xlu1 %749 }
  0xa1   : > { %617 = vmatpush.msra.mxu2 %v303_v31  ;;  %618 = vmatpush.msra.mxu3 %v303_v31  ;;  %v747_v36 = vunpack.i.h.bf16 %v745_v32  ;;  %v746_v37 = vunpack.i.l.bf16 %v745_v32  ;;  %v752_v38 = vunpack.i.h.bf16 %v750_v34  ;;  %v751_v39 = vunpack.i.l.bf16 %v750_v34 }
  0xa2   : > { %363 = vmatpush.msra.mxu0 %v291_v33  ;;  %619 = vmatpush.msra.mxu1 %v291_v33 }
  0xa3   : > { %620 = vmatpush.msra.mxu2 %v291_v33  ;;  %621 = vmatpush.msra.mxu3 %v291_v33  ;;  %v278_v40 = vsel %vm276_vm3, %v746_v37, %v747_v36  ;;  %v277_v41 = vsel %vm276_vm3, %v751_v39, %v752_v38 }
  0xa4   : > { %364 = vmatpush.msra.mxu0 %v290_v35  ;;  %622 = vmatpush.msra.mxu1 %v290_v35 }
  0xa5   : > { %623 = vmatpush.msra.mxu2 %v290_v35  ;;  %624 = vmatpush.msra.mxu3 %v290_v35 }
  0xa6   : > { %365 = vmatpush.msra.mxu0 %v278_v40  ;;  %625 = vmatpush.msra.mxu1 %v278_v40 }
  0xa7   : > { %626 = vmatpush.msra.mxu2 %v278_v40  ;;  %627 = vmatpush.msra.mxu3 %v278_v40 }
  0xa8   : > { %366 = vmatpush.msra.mxu0 %v277_v41  ;;  %628 = vmatpush.msra.mxu1 %v277_v41  ;;  %v410_v60 = vpop.permute.xlu0 %409  ;;  %v415_v1 = vpop.permute.xlu1 %414 }
  0xa9   : > { %629 = vmatpush.msra.mxu2 %v277_v41  ;;  %630 = vmatpush.msra.mxu3 %v277_v41 }
  0xaa   : > { %367 = vmatpush.msra.mxu0 %v977_v0  ;;  %631 = vmatpush.msra.mxu1 %v977_v0 }
  0xab   : > { %632 = vmatpush.msra.mxu2 %v977_v0  ;;  %633 = vmatpush.msra.mxu3 %v977_v0 }
  0xac   : > { %368 = vmatpush.msra.mxu0 %v980_v3  ;;  %634 = vmatpush.msra.mxu1 %v980_v3 }
  0xad   : > { %635 = vmatpush.msra.mxu2 %v980_v3  ;;  %636 = vmatpush.msra.mxu3 %v980_v3 }
  0xae   : > { %599 = vmatmul.msk.f32.vlgmr.msra.gmra.mxu2 %vm328_vm4, %v324_v42  ;;  %601 = vmatmul.msk.f32.vlgmr.msra.gmra.mxu3 %vm328_vm4, %v326_v43 }
  0xaf   : > { %595 = vmatmul.msk.f32.vlgmr.msra.gmra.mxu0 %vm328_vm4, %v320_v44  ;;  %597 = vmatmul.msk.f32.vlgmr.msra.gmra.mxu1 %vm328_vm4, %v322_v45 }
  0xb6   : > { %600 = vmatmul.msk.f32.gmra.mxu2 %vm328_vm4, %v325_v47  ;;  %602 = vmatmul.msk.f32.gmra.mxu3 %vm328_vm4, %v327_v48 }
  0xb7   : > { %596 = vmatmul.msk.f32.gmra.mxu0 %vm328_vm4, %v321_v49  ;;  %598 = vmatmul.msk.f32.gmra.mxu1 %vm328_vm4, %v323_v50 }
 0x12c   : > { %v370_v52 = vpop.f32.mrf.mxu0  ;;  %v376_v53 = vpop.f32.mrf.mxu1 }
 0x131   : > { %v382_v54 = vpop.f32.mrf.mxu2  ;;  %v388_v55 = vpop.f32.mrf.mxu3 }
 0x132   : > { %v394_v58 = vmax.f32 %v370_v52, %v382_v54  ;;  %v396_v63 = vmax.f32 %v376_v53, %v388_v55 }
 0x134   : > { %v373_v57 = vpop.f32.mrf.mxu0  ;;  %v379_v59 = vpop.f32.mrf.mxu1  ;;  %v422_v2 = vadd.f32 %v405_v56, %v394_v58  ;;  %v424_v5 = vadd.f32 %v415_v1, %v396_v63 }
 0x139   : > { %v385_v61 = vpop.f32.mrf.mxu2  ;;  %v391_v62 = vpop.f32.mrf.mxu3 }
 0x13a   : > { %v395_v0 = vmax.f32 %v373_v57, %v385_v61  ;;  %v397_v3 = vmax.f32 %v379_v59, %v391_v62 }
 0x13c   : > { %v423_v4 = vadd.f32 %v410_v60, %v395_v0  ;;  %v425_v8 = vadd.f32 %v420_v7, %v397_v3 }
 0x13e   : > { %v426_v6 = vmax.f32 %v422_v2, %v423_v4 }
 0x140   : > { %v427_v9 = vmax.f32 %v426_v6, %v424_v5 }
 0x142   : > { %v428_v10 = vmax.f32 %v427_v9, %v425_v8 }
 0x144   : > { %429 = vst [vmem:[#allocation2] sm:$0xff] %v428_v10 }
 0x145 PF: > { %v450_v11 = vld [vmem:[%s970_s7 + $0x78] sm:$0xff]  ;;  %v449_v12 = vld [vmem:[%s970_s7 + $0x70] sm:$0xff]  ;;  %v448_v13 = vld [vmem:[%s970_s7 + $0x68] sm:$0xff]  ;;  %s432_s14 = scalar_lea.vmem [#allocation2], %s838_s21  ;;  %p603_p1 = scmp.ne.s32.totalorder %s838_s21, 7 }
 0x146   : > { %451 = vmatpush.msra.mxu0 %v450_v11  ;;  %v447_v14 = vld [vmem:[%s970_s7 + $0x60] sm:$0xff]  ;;  %v446_v15 = vld [vmem:[%s970_s7 + $0x58] sm:$0xff]  ;;  %v445_v16 = vld [vmem:[%s970_s7 + $0x50] sm:$0xff] }
 0x147   : > { %v444_v17 = vld [vmem:[%s970_s7 + $0x48] sm:$0xff]  ;;  %v443_v18 = vld [vmem:[%s970_s7 + $0x40] sm:$0xff]  ;;  %v442_v19 = vld [vmem:[%s970_s7 + $0x38] sm:$0xff] }
 0x148   : > { %452 = vmatpush.msra.mxu0 %v449_v12  ;;  %v441_v20 = vld [vmem:[%s970_s7 + $0x30] sm:$0xff]  ;;  %v440_v21 = vld [vmem:[%s970_s7 + $0x28] sm:$0xff]  ;;  %v439_v22 = vld [vmem:[%s970_s7 + $0x20] sm:$0xff] }
 0x149   : > { %v438_v23 = vld [vmem:[%s970_s7 + $0x18] sm:$0xff]  ;;  %v437_v24 = vld [vmem:[%s970_s7 + $0x10] sm:$0xff]  ;;  %v436_v25 = vld [vmem:[%s970_s7 + $0x8] sm:$0xff] }
 0x14a   : > { %453 = vmatpush.msra.mxu0 %v448_v13  ;;  %v435_v26 = vld [vmem:[%s970_s7] sm:$0xff] }
 0x14b   : > { %v433_v27 = vld [vmem:[%s432_s14] sm:$0x1] }
 0x14c   : > { %454 = vmatpush.msra.mxu0 %v447_v14  ;;  %v434_v28 = vld [vmem:[%s974_s8] sm:$0x1] }
 0x14e   : > { %455 = vmatpush.msra.mxu0 %v446_v15 }
 0x150   : > { %456 = vmatpush.msra.mxu0 %v445_v16 }
 0x152   : > { %457 = vmatpush.msra.mxu0 %v444_v17 }
 0x154   : > { %458 = vmatpush.msra.mxu0 %v443_v18 }
 0x156   : > { %459 = vmatpush.msra.mxu0 %v442_v19 }
 0x158   : > { %460 = vmatpush.msra.mxu0 %v441_v20 }
 0x15a   : > { %461 = vmatpush.msra.mxu0 %v440_v21 }
 0x15c   : > { %462 = vmatpush.msra.mxu0 %v439_v22 }
 0x15e   : > { %463 = vmatpush.msra.mxu0 %v438_v23 }
 0x160   : > { %464 = vmatpush.msra.mxu0 %v437_v24 }
 0x162   : > { %465 = vmatpush.msra.mxu0 %v436_v25 }
 0x164   : > { %466 = vmatpush.msra.mxu0 %v435_v26 }
 0x165   : > { %467 = vmatmul.f32.vlgmr.msra.gmra.mxu0 %v433_v27 }
 0x1e1   : > { %476 = sbr.rel (%p603_p1) target bundleno = 518 (0x206), region = 48 }
 0x1e2   : > { %v468_v29 = vpop.f32.mrf.mxu0 }
 0x1e3   : > { %v471_v30 = vadd.f32 %v468_v29, %v434_v28 }
 0x1e5   : > { %472 = vst [vmem:[%s974_s8] sm:$0x1] %v471_v30 }
 0x1ec   : > { %v477_v31 = vld [vmem:[%s974_s8] sm:$0x1] }
 0x1ed   : > { %v479_v32 = vmin.f32 %v477_v31, 20.0  ;;  %vm478_vm6 = vcmp.gt.f32.partialorder %v477_v31, 20.0 }
 0x1ef   : > { %v480_v33 = vmul.f32 1.442695, %v479_v32 }
 0x1f1   : > { %756 = vpow2.f32 %v480_v33 }
 0x1f7   : > { %v757_v34 = vpop.eup %756 }
 0x1f8   : > { %v482_v35 = vadd.f32 1.0, %v757_v34  ;;  %v485_v36 = vmul.f32 -0.5, %v757_v34  ;;  %v488_v38 = vand.u32 2147483647, %v757_v34 }
 0x1fa   : > { %758 = vlog2.f32 %v482_v35  ;;  %v486_v37 = vadd.f32 1.0, %v485_v36  ;;  %vm489_vm5 = vcmp.lt.f32.partialorder %v488_v38, 0.0004427343 }
 0x1fc   : > { %v487_v39 = vmul.f32 %v757_v34, %v486_v37 }
 0x200   : > { %v759_v40 = vpop.eup %758 }
 0x201   : > { %v484_v41 = vmul.f32 0.6931472, %v759_v40 }
 0x203   : > { %v490_v42 = vsel %vm489_vm5, %v487_v39, %v484_v41 }
 0x204   : > { %v491_v43 = vsel %vm478_vm6, %v477_v31, %v490_v42 }
 0x205   : > { %492 = vst [vmem:[%s974_s8] sm:$0x1] %v491_v43 }
 0x206 PF: > { %s502_s15 = scalar_lea.hbm %s1115_s5, %s842_s22  ;;  %s504_s16 = sshll.u32 %s974_s8, 4  ;;  %s505_s16 = int_to_ptr.vmem [resolvable:$true] %s504_s16 }
 0x207   : > { %s506_s17 = sshll.u32 %s502_s15, 4  ;;  %s494_s26 = scalar_lea.sflag [#allocation4], %s243_s10  ;;  %s507_s17 = int_to_ptr.hbm [resolvable:$true] %s506_s17 }
 0x208   : > { %s774_s27 = sshra.s32 %s507_s17, 4  ;;  %s780_s14 = scalar_lea.hbm %s1115_s5, 2  ;;  %s775_s27 = int_to_ptr.hbm [resolvable:$true] %s774_s27 }
 0x209   : > { %s776_s12 = scalar_lea.hbm %s775_s27, 1  ;;  %p781_p6 = scmp.lt.s32.totalorder %s775_s27, %s1115_s5 }
 0x20a   : > { %p777_p2 = scmp.ne.s32.totalorder %s775_s27, %s776_s12  ;;  %p782_p7 = scmp.lt.s32.totalorder %s780_s14, %s776_s12 }
 0x20c   : > { %p778_p4 = pnand %p777_p2, %p940_p3  ;;  %p783_p8 = por %p782_p7, %p781_p6 }
 0x20e   : > { %p779_p5 = pneg %p778_p4 }
 0x210   : > { %p784_p10 = pnand %p783_p8, %p779_p5 }
 0x212   : > { %787 = shalt.err (!%p784_p10)
}
 0x213   : > { %637 = dma.vmem_to_hbm [thread:$0]  (%p940_p3), %s505_s16, 16, %s507_s17, %s494_s26  }
 0x214 PF: > { %p643_p11 = scmp.ge.s32.totalorder %s854_s25, 2  ;;  %s518_s22 = sand.u32 1, %s826_s18  }
 0x215   : > { %s519_s10 = scalar_lea.sflag [#allocation4], %s518_s22 }
 0x216   : > { %p640_p12 = pnand %p643_p11, %p950_p9 }
 0x218   : > { %p641_p13 = pneg %p640_p12 }
 0x21a   : > { %821 = dma.done.wait (%p641_p13), %s519_s10, 16  }
 0x21b   : > { %823 = vsyncadd (%p641_p13), %s519_s10, 4294967280  ;;  %s18_s25 = sadd.s32 1, %s854_s25   ;;  %s1118_s18 = smov %s830_s19 }
 0x21c   : > { %p15_p0 = scmp.ge.s32.totalorder %s18_s25, 18   ;;  %s1119_s19 = smov %s834_s20 }
 0x21d   : > { %s1120_s20 = smov %s958_s9  ;;  %s1121_s21 = smov %s846_s23 }
 0x21e   : > { %s1122_s22 = smov %s850_s24  ;;  %s1123_s23 = smov %s1126_s28 }
 0x21f   : > { %s1124_s24 = smov %s1130_s29  ;;  %17 = sbr.rel (!%p15_p0) target bundleno = 5 (0x5), region = 87 }
 0x224   :  { %524 = vsyncpa [#allocation4], 1 }
 0x225   :  { %526 = vsyncpa [#allocation4 + $0x1], 1 }

</bundles_post_ra>
